<compile_context>
chip_gen: v6e
topology: v6e:2x2x1
jax: 0.10.0
libtpu: 0.0.40
codegen_flags: <defaults>
</compile_context>

<pallas_src>
import math
from collections import OrderedDict
from functools import partial

import jax
import jax.numpy as jnp
import numpy as np
from jax.experimental import pallas as pl
from jax.experimental.pallas import tpu as pltpu


def _round_up(x, m):
    return ((x + m - 1) // m) * m


# -----------------------------------------------------------------------------
# Kernel: one grid step = NB hyper-MLPs of one bucket
# -----------------------------------------------------------------------------
def fused_fcblock_block_kernel(z_ref, w0_ref, w1_ref, w2_ref, b01_ref, b2_ref,
                               out_ref, *, nb, hidden):
    """
    z_ref:   (B_pad, F)          shared embedding (resident across the grid)
    w0_ref:  (F, NB*H)           layer-0 weights of the NB MLPs, laid out wide
    w1_ref:  (NB, H, H)
    w2_ref:  (NB, H, OUT_pad)
    b01_ref: (NB, 2, H)          rows: b0, b1
    b2_ref:  (NB, 1, OUT_pad)
    out_ref: (NB, B_pad, OUT_pad)
    """
    z = z_ref[...].astype(jnp.float32)
    # Layer 0 fused across all NB MLPs: one wide MXU pass instead of NB tiny dots.
    h0 = jnp.dot(z, w0_ref[...].astype(jnp.float32),
                 preferred_element_type=jnp.float32)          # (B_pad, NB*H)
    for n in range(nb):                                        # static unroll
        b01 = b01_ref[n]                                       # (2, H) f32
        h = jnp.maximum(h0[:, n * hidden:(n + 1) * hidden] + b01[0:1, :], 0.0)
        h = jnp.dot(h, w1_ref[n].astype(jnp.float32),
                    preferred_element_type=jnp.float32) + b01[1:2, :]
        h = jnp.maximum(h, 0.0)
        o = jnp.dot(h, w2_ref[n].astype(jnp.float32),
                    preferred_element_type=jnp.float32) + b2_ref[n]
        out_ref[n] = o.astype(out_ref.dtype)


def run_hypernet_bucket(z_pad, w0_wide, w1s, w2s, b01s, b2s, *, nb, hidden):
    """One pallas_call over all MLPs of a bucket (grid over blocks of NB MLPs)."""
    B_pad, F = z_pad.shape
    n_pad = w1s.shape[0]
    out_pad = w2s.shape[-1]
    grid = (n_pad // nb,)

    # Rough double-buffered VMEM estimate; only raise the scoped limit when a
    # large OUT width actually needs it.
    wbytes = w0_wide.dtype.itemsize
    blk_bytes = (F * nb * hidden * wbytes + nb * hidden * hidden * wbytes
                 + nb * hidden * out_pad * wbytes + nb * 2 * hidden * 4
                 + nb * out_pad * 4 + nb * B_pad * out_pad * 4)
    est = B_pad * F * 4 + 2 * blk_bytes
    cp_kwargs = dict(dimension_semantics=("parallel",))
    if est > (24 << 20):
        cp_kwargs["vmem_limit_bytes"] = int(min(est + (8 << 20), 110 << 20))

    return pl.pallas_call(
        partial(fused_fcblock_block_kernel, nb=nb, hidden=hidden),
        out_shape=jax.ShapeDtypeStruct((n_pad, B_pad, out_pad), jnp.float32),
        grid=grid,
        in_specs=[
            pl.BlockSpec((B_pad, F), lambda g: (0, 0)),            # z resident
            pl.BlockSpec((F, nb * hidden), lambda g: (0, g)),      # wide W0 slab
            pl.BlockSpec((nb, hidden, hidden), lambda g: (g, 0, 0)),
            pl.BlockSpec((nb, hidden, out_pad), lambda g: (g, 0, 0)),
            pl.BlockSpec((nb, 2, hidden), lambda g: (g, 0, 0)),
            pl.BlockSpec((nb, 1, out_pad), lambda g: (g, 0, 0)),
        ],
        out_specs=pl.BlockSpec((nb, B_pad, out_pad), lambda g: (g, 0, 0)),
        compiler_params=pltpu.CompilerParams(**cp_kwargs),
    )(z_pad, w0_wide, w1s, w2s, b01s, b2s)


def _choose_nb(n, per_mlp_bytes, lane_unit, budget=4 << 20, cap=32):
    """MLPs per grid step: multiple of lane_unit (keeps the wide layer-0 block
    128-lane aligned), bounded by a per-block VMEM budget and the bucket size."""
    nb = max(1, budget // max(per_mlp_bytes, 1))
    nb = min(nb, cap, _round_up(n, lane_unit))
    nb = max(lane_unit, (nb // lane_unit) * lane_unit)
    return int(nb)


# -----------------------------------------------------------------------------
# Parameter construction (mirrors FCBlock / hyper_weight_init / hyper_bias_init)
# -----------------------------------------------------------------------------
def kaiming_normal(key, fan_in, shape):
    # kaiming_normal_(nonlinearity='relu', mode='fan_in'): std = sqrt(2 / fan_in)
    std = math.sqrt(2.0 / fan_in)
    return std * jax.random.normal(key, shape, dtype=jnp.float32)


def make_fcblock_params(key, in_features, hidden_features, out_features, kind,
                        fan_in_main):
    """Parameters of one FCBlock (weights stored as (in, out))."""
    ks = jax.random.split(key, 4)
    w0 = kaiming_normal(ks[0], in_features, (in_features, hidden_features))
    b0 = jnp.zeros((hidden_features,), jnp.float32)
    w1 = kaiming_normal(ks[1], hidden_features, (hidden_features, hidden_features))
    b1 = jnp.zeros((hidden_features,), jnp.float32)
    # final layer: hyper init -> kaiming / 100, bias uniform(-1/fan_in, 1/fan_in)
    w2 = kaiming_normal(ks[2], hidden_features,
                        (hidden_features, out_features)) / 100.0
    if kind == "weight":
        bound = 1.0 / fan_in_main          # hyper_weight_init
    else:
        bound = 1.0 / hidden_features      # hyper_bias_init (fan-in of last layer)
    b2 = jax.random.uniform(ks[3], (out_features,), jnp.float32, -bound, bound)
    return w0, b0, w1, b1, w2, b2


class HyperNetworkPallas:
    """JAX/Pallas re-implementation of HyperNetwork.forward."""

    def __init__(self, hyper_in_features, hyper_hidden_layers,
                 hyper_hidden_features, hypo_param_shapes, key,
                 weight_dtype=jnp.bfloat16):
        # TODO(synk): kernel is specialized for num_hidden_layers == 1
        # (Linear-ReLU, Linear-ReLU, Linear); generalize the layer loop if needed.
        assert hyper_hidden_layers == 1
        F = hyper_in_features
        H = hyper_hidden_features
        self.hidden = H
        self.names = list(hypo_param_shapes.keys())
        self.param_shapes = [tuple(s) for s in hypo_param_shapes.values()]
        self.out_features = [math.prod(s) for s in self.param_shapes]

        keys = jax.random.split(key, len(self.names))
        records = []
        for k, name, shape, out_f in zip(keys, self.names, self.param_shapes,
                                         self.out_features):
            kind = "weight" if "weight" in name else "bias"
            w0, b0, w1, b1, w2, b2 = make_fcblock_params(k, F, H, out_f, kind,
                                                         shape[-1])
            records.append((name, shape, out_f, w0, b0, w1, b1, w2, b2))

        # Bucket parameters by padded output width: a 16-float bias head no
        # longer streams zeros up to the width of the largest weight tensor.
        buckets = OrderedDict()
        for rec in records:
            out_pad = _round_up(rec[2], 128)
            buckets.setdefault(out_pad, []).append(rec)

        lane_unit = 128 // math.gcd(H, 128)
        wbytes = jnp.dtype(weight_dtype).itemsize
        bucket_meta, bucket_arrays = [], []
        for out_pad, items in buckets.items():
            n = len(items)
            per_mlp = ((F * H + H * H + H * out_pad) * wbytes
                       + (2 * H + out_pad) * 4 + 8 * out_pad * 4)
            nb = _choose_nb(n, per_mlp, lane_unit)
            n_pad = _round_up(n, nb)
            # TODO(synk): for very wide hypo params (out_pad >> 8K) additionally
            # tile OUT_pad with a second grid axis so double-buffered W2/out
            # blocks fit v5e's 16 MiB default scoped VMEM / v7x's 64 MiB VMEM.

            w0_cols, w1_l, w2_l, b01_l, b2_l, meta_items = [], [], [], [], [], []
            for slot, (name, shape, out_f, w0, b0, w1, b1, w2, b2) in enumerate(items):
                w0_cols.append(w0)
                w1_l.append(w1)
                w2_l.append(jnp.pad(w2, ((0, 0), (0, out_pad - out_f))))
                b01_l.append(jnp.stack([b0, b1]))                       # (2, H)
                b2_l.append(jnp.pad(b2, (0, out_pad - out_f))[None, :])  # (1, OUT_pad)
                meta_items.append((name, shape, out_f, slot))

            pad_n = n_pad - n
            w0_wide = jnp.concatenate(w0_cols, axis=1)                  # (F, n*H)
            w1s = jnp.stack(w1_l)
            w2s = jnp.stack(w2_l)
            b01s = jnp.stack(b01_l)
            b2s = jnp.stack(b2_l)
            if pad_n:
                w0_wide = jnp.pad(w0_wide, ((0, 0), (0, pad_n * H)))
                w1s = jnp.pad(w1s, ((0, pad_n), (0, 0), (0, 0)))
                w2s = jnp.pad(w2s, ((0, pad_n), (0, 0), (0, 0)))
                b01s = jnp.pad(b01s, ((0, pad_n), (0, 0), (0, 0)))
                b2s = jnp.pad(b2s, ((0, pad_n), (0, 0), (0, 0)))

            bucket_arrays.append((w0_wide.astype(weight_dtype),
                                  w1s.astype(weight_dtype),
                                  w2s.astype(weight_dtype),
                                  b01s.astype(jnp.float32),
                                  b2s.astype(jnp.float32)))
            bucket_meta.append(dict(out_pad=out_pad, nb=nb,
                                    items=tuple(meta_items)))

        self._bucket_meta = tuple(bucket_meta)
        self._bucket_arrays = tuple(bucket_arrays)

        names = self.names
        meta = self._bucket_meta
        hidden = H

        @jax.jit
        def _forward(z, bucket_arrays):
            B = z.shape[0]
            B_pad = _round_up(max(B, 8), 8)
            z_pad = jnp.pad(z.astype(jnp.float32), ((0, B_pad - B), (0, 0)))
            results = {}
            for m, arrs in zip(meta, bucket_arrays):
                flat = run_hypernet_bucket(z_pad, *arrs, nb=m["nb"], hidden=hidden)
                for (name, shape, out_f, slot) in m["items"]:
                    results[name] = flat[slot, :B, :out_f].reshape((B,) + shape)
            return OrderedDict((nm, results[nm]) for nm in names)

        self._forward = _forward

    def __call__(self, z):
        return self._forward(z, self._bucket_arrays)

    def reference(self, z):
        """Pure-numpy float64 forward using the same stored parameters."""
        z64 = np.asarray(z, dtype=np.float64)
        B = z64.shape[0]
        H = self.hidden
        results = {}
        for m, arrs in zip(self._bucket_meta, self._bucket_arrays):
            w0w, w1s, w2s, b01s, b2s = [
                np.asarray(jnp.asarray(a, jnp.float32), dtype=np.float64)
                for a in arrs]
            for (name, shape, out_f, slot) in m["items"]:
                w0 = w0w[:, slot * H:(slot + 1) * H]
                h = np.maximum(z64 @ w0 + b01s[slot, 0], 0.0)
                h = np.maximum(h @ w1s[slot] + b01s[slot, 1], 0.0)
                o = h @ w2s[slot][:, :out_f] + b2s[slot, 0, :out_f]
                results[name] = o.reshape((B,) + shape)
        return OrderedDict((nm, results[nm]) for nm in self.names)


if __name__ == "__main__":
    # Synthetic hypo-module: a tiny 2-layer MLP (in=2, hidden=16, out=3).
    hypo_param_shapes = OrderedDict([
        ("net.0.0.weight", (16, 2)),
        ("net.0.0.bias",   (16,)),
        ("net.1.0.weight", (3, 16)),
        ("net.1.0.bias",   (3,)),
    ])

    hyper_in_features = 32
    hyper_hidden_layers = 1
    hyper_hidden_features = 32
    batch = 2

    key = jax.random.PRNGKey(0)
    k_params, k_z = jax.random.split(key)

    hypernet = HyperNetworkPallas(hyper_in_features, hyper_hidden_layers,
                                  hyper_hidden_features, hypo_param_shapes,
                                  k_params)

    z = jax.random.normal(k_z, (batch, hyper_in_features), dtype=jnp.float32)

    out = hypernet(z)
    jax.block_until_ready(out)

    # shapes match (batch,) + param_shape
    for name, shape in hypo_param_shapes.items():
        assert out[name].shape == (batch,) + tuple(shape), (name, out[name].shape)

    # numerical reference (float64 numpy, same stored weights); tolerance covers
    # MXU vs. host accumulation-order / precision-path differences only.
    ref = hypernet.reference(z)
    for name in hypo_param_shapes:
        np.testing.assert_allclose(np.asarray(out[name], dtype=np.float64),
                                   ref[name], rtol=2e-3, atol=2e-3)

    print("KERNEL_OK")
</pallas_src>

<mosaic_0001>
module attributes {stable_mosaic.version = 11 : i64} {
  func.func @fused_fcblock_block_kernel(%arg0: i32, %arg1: memref<8x32xf32, #tpu.memory_space<vmem>>, %arg2: memref<32x128xbf16, #tpu.memory_space<vmem>>, %arg3: memref<4x32x32xbf16, #tpu.memory_space<vmem>>, %arg4: memref<4x32x128xbf16, #tpu.memory_space<vmem>>, %arg5: memref<4x2x32xf32, #tpu.memory_space<vmem>>, %arg6: memref<4x1x128xf32, #tpu.memory_space<vmem>>, %arg7: memref<4x8x128xf32, #tpu.memory_space<vmem>>) attributes {dimension_semantics = [#tpu.dimension_semantics<parallel>], iteration_bounds = array<i64: 1>, scalar_prefetch = 0 : i64, scratch_operands = 0 : i64, tpu.core_type = #tpu.core_type<tc>, window_params = [{pipeline_mode = #tpu.pipeline_mode<synchronous>, transform_indices = @transform_0, window_bounds = array<i64: 8, 32>}, {transform_indices = @transform_1, window_bounds = array<i64: 32, 128>}, {transform_indices = @transform_2, window_bounds = array<i64: 4, 32, 32>}, {transform_indices = @transform_3, window_bounds = array<i64: 4, 32, 128>}, {transform_indices = @transform_4, window_bounds = array<i64: 4, 2, 32>}, {transform_indices = @transform_5, window_bounds = array<i64: 4, 1, 128>}, {transform_indices = @transform_6, window_bounds = array<i64: 4, 8, 128>}]} {
    %c0 = arith.constant 0 : index
    %c0_0 = arith.constant 0 : index
    %0 = vector.load %arg1[%c0, %c0_0] : memref<8x32xf32, #tpu.memory_space<vmem>>, vector<8x32xf32>
    %c0_1 = arith.constant 0 : index
    %c0_2 = arith.constant 0 : index
    %1 = vector.load %arg2[%c0_1, %c0_2] : memref<32x128xbf16, #tpu.memory_space<vmem>>, vector<32x128xbf16>
    %2 = arith.extf %1 : vector<32x128xbf16> to vector<32x128xf32>
    %cst = arith.constant dense<0.000000e+00> : vector<8x128xf32>
    %3 = tpu.matmul %0, %2, %cst {dimension_numbers = #tpu.dot_dimension_numbers<[1], [0], [0], [1], [0, 0, 1, 1], [], []>} : vector<8x32xf32>, vector<32x128xf32>, vector<8x128xf32> -> vector<8x128xf32>
    %c0_3 = arith.constant 0 : index
    %c0_4 = arith.constant 0 : index
    %c0_5 = arith.constant 0 : index
    %4 = vector.load %arg5[%c0_3, %c0_4, %c0_5] : memref<4x2x32xf32, #tpu.memory_space<vmem>>, vector<1x2x32xf32>
    %5 = vector.shape_cast %4 : vector<1x2x32xf32> to vector<2x32xf32>
    %6 = vector.extract_strided_slice %3 {offsets = [0, 0], sizes = [8, 32], strides = [1, 1]} : vector<8x128xf32> to vector<8x32xf32>
    %7 = vector.extract_strided_slice %5 {offsets = [0, 0], sizes = [1, 32], strides = [1, 1]} : vector<2x32xf32> to vector<1x32xf32>
    %8 = vector.broadcast %7 : vector<1x32xf32> to vector<8x32xf32>
    %9 = arith.addf %6, %8 : vector<8x32xf32>
    %cst_6 = arith.constant 0.000000e+00 : f32
    %10 = vector.broadcast %cst_6 : f32 to vector<8x32xf32>
    %11 = arith.maximumf %9, %10 : vector<8x32xf32>
    %c0_7 = arith.constant 0 : index
    %c0_8 = arith.constant 0 : index
    %c0_9 = arith.constant 0 : index
    %12 = vector.load %arg3[%c0_7, %c0_8, %c0_9] : memref<4x32x32xbf16, #tpu.memory_space<vmem>>, vector<1x32x32xbf16>
    %13 = vector.shape_cast %12 : vector<1x32x32xbf16> to vector<32x32xbf16>
    %14 = arith.extf %13 : vector<32x32xbf16> to vector<32x32xf32>
    %cst_10 = arith.constant dense<0.000000e+00> : vector<8x32xf32>
    %15 = tpu.matmul %11, %14, %cst_10 {dimension_numbers = #tpu.dot_dimension_numbers<[1], [0], [0], [1], [0, 0, 1, 1], [], []>} : vector<8x32xf32>, vector<32x32xf32>, vector<8x32xf32> -> vector<8x32xf32>
    %16 = vector.extract_strided_slice %5 {offsets = [1, 0], sizes = [1, 32], strides = [1, 1]} : vector<2x32xf32> to vector<1x32xf32>
    %17 = vector.broadcast %16 : vector<1x32xf32> to vector<8x32xf32>
    %18 = arith.addf %15, %17 : vector<8x32xf32>
    %cst_11 = arith.constant 0.000000e+00 : f32
    %19 = vector.broadcast %cst_11 : f32 to vector<8x32xf32>
    %20 = arith.maximumf %18, %19 : vector<8x32xf32>
    %c0_12 = arith.constant 0 : index
    %c0_13 = arith.constant 0 : index
    %c0_14 = arith.constant 0 : index
    %21 = vector.load %arg4[%c0_12, %c0_13, %c0_14] : memref<4x32x128xbf16, #tpu.memory_space<vmem>>, vector<1x32x128xbf16>
    %22 = vector.shape_cast %21 : vector<1x32x128xbf16> to vector<32x128xbf16>
    %23 = arith.extf %22 : vector<32x128xbf16> to vector<32x128xf32>
    %cst_15 = arith.constant dense<0.000000e+00> : vector<8x128xf32>
    %24 = tpu.matmul %20, %23, %cst_15 {dimension_numbers = #tpu.dot_dimension_numbers<[1], [0], [0], [1], [0, 0, 1, 1], [], []>} : vector<8x32xf32>, vector<32x128xf32>, vector<8x128xf32> -> vector<8x128xf32>
    %c0_16 = arith.constant 0 : index
    %c0_17 = arith.constant 0 : index
    %c0_18 = arith.constant 0 : index
    %25 = vector.load %arg6[%c0_16, %c0_17, %c0_18] : memref<4x1x128xf32, #tpu.memory_space<vmem>>, vector<1x1x128xf32>
    %26 = vector.shape_cast %25 : vector<1x1x128xf32> to vector<1x128xf32>
    %27 = vector.broadcast %26 : vector<1x128xf32> to vector<8x128xf32>
    %28 = arith.addf %24, %27 : vector<8x128xf32>
    %c0_19 = arith.constant 0 : index
    %c0_20 = arith.constant 0 : index
    %c0_21 = arith.constant 0 : index
    %29 = vector.load %arg7[%c0_19, %c0_20, %c0_21] : memref<4x8x128xf32, #tpu.memory_space<vmem>>, vector<1x8x128xf32>
    %30 = vector.shape_cast %29 : vector<1x8x128xf32> to vector<8x128xf32>
    %31 = vector.shape_cast %28 : vector<8x128xf32> to vector<1x8x128xf32>
    tpu.vector_store %arg7[%c0_19, %c0_20, %c0_21], %31 {strides = array<i32>} : memref<4x8x128xf32, #tpu.memory_space<vmem>>, vector<1x8x128xf32>,
    %c1 = arith.constant 1 : index
    %c0_22 = arith.constant 0 : index
    %c0_23 = arith.constant 0 : index
    %32 = vector.load %arg5[%c1, %c0_22, %c0_23] : memref<4x2x32xf32, #tpu.memory_space<vmem>>, vector<1x2x32xf32>
    %33 = vector.shape_cast %32 : vector<1x2x32xf32> to vector<2x32xf32>
    %34 = vector.extract_strided_slice %3 {offsets = [0, 32], sizes = [8, 32], strides = [1, 1]} : vector<8x128xf32> to vector<8x32xf32>
    %35 = vector.extract_strided_slice %33 {offsets = [0, 0], sizes = [1, 32], strides = [1, 1]} : vector<2x32xf32> to vector<1x32xf32>
    %36 = vector.broadcast %35 : vector<1x32xf32> to vector<8x32xf32>
    %37 = arith.addf %34, %36 : vector<8x32xf32>
    %cst_24 = arith.constant 0.000000e+00 : f32
    %38 = vector.broadcast %cst_24 : f32 to vector<8x32xf32>
    %39 = arith.maximumf %37, %38 : vector<8x32xf32>
    %c1_25 = arith.constant 1 : index
    %c0_26 = arith.constant 0 : index
    %c0_27 = arith.constant 0 : index
    %40 = vector.load %arg3[%c1_25, %c0_26, %c0_27] : memref<4x32x32xbf16, #tpu.memory_space<vmem>>, vector<1x32x32xbf16>
    %41 = vector.shape_cast %40 : vector<1x32x32xbf16> to vector<32x32xbf16>
    %42 = arith.extf %41 : vector<32x32xbf16> to vector<32x32xf32>
    %cst_28 = arith.constant dense<0.000000e+00> : vector<8x32xf32>
    %43 = tpu.matmul %39, %42, %cst_28 {dimension_numbers = #tpu.dot_dimension_numbers<[1], [0], [0], [1], [0, 0, 1, 1], [], []>} : vector<8x32xf32>, vector<32x32xf32>, vector<8x32xf32> -> vector<8x32xf32>
    %44 = vector.extract_strided_slice %33 {offsets = [1, 0], sizes = [1, 32], strides = [1, 1]} : vector<2x32xf32> to vector<1x32xf32>
    %45 = vector.broadcast %44 : vector<1x32xf32> to vector<8x32xf32>
    %46 = arith.addf %43, %45 : vector<8x32xf32>
    %cst_29 = arith.constant 0.000000e+00 : f32
    %47 = vector.broadcast %cst_29 : f32 to vector<8x32xf32>
    %48 = arith.maximumf %46, %47 : vector<8x32xf32>
    %c1_30 = arith.constant 1 : index
    %c0_31 = arith.constant 0 : index
    %c0_32 = arith.constant 0 : index
    %49 = vector.load %arg4[%c1_30, %c0_31, %c0_32] : memref<4x32x128xbf16, #tpu.memory_space<vmem>>, vector<1x32x128xbf16>
    %50 = vector.shape_cast %49 : vector<1x32x128xbf16> to vector<32x128xbf16>
    %51 = arith.extf %50 : vector<32x128xbf16> to vector<32x128xf32>
    %cst_33 = arith.constant dense<0.000000e+00> : vector<8x128xf32>
    %52 = tpu.matmul %48, %51, %cst_33 {dimension_numbers = #tpu.dot_dimension_numbers<[1], [0], [0], [1], [0, 0, 1, 1], [], []>} : vector<8x32xf32>, vector<32x128xf32>, vector<8x128xf32> -> vector<8x128xf32>
    %c1_34 = arith.constant 1 : index
    %c0_35 = arith.constant 0 : index
    %c0_36 = arith.constant 0 : index
    %53 = vector.load %arg6[%c1_34, %c0_35, %c0_36] : memref<4x1x128xf32, #tpu.memory_space<vmem>>, vector<1x1x128xf32>
    %54 = vector.shape_cast %53 : vector<1x1x128xf32> to vector<1x128xf32>
    %55 = vector.broadcast %54 : vector<1x128xf32> to vector<8x128xf32>
    %56 = arith.addf %52, %55 : vector<8x128xf32>
    %c1_37 = arith.constant 1 : index
    %c0_38 = arith.constant 0 : index
    %c0_39 = arith.constant 0 : index
    %57 = vector.load %arg7[%c1_37, %c0_38, %c0_39] : memref<4x8x128xf32, #tpu.memory_space<vmem>>, vector<1x8x128xf32>
    %58 = vector.shape_cast %57 : vector<1x8x128xf32> to vector<8x128xf32>
    %59 = vector.shape_cast %56 : vector<8x128xf32> to vector<1x8x128xf32>
    tpu.vector_store %arg7[%c1_37, %c0_38, %c0_39], %59 {strides = array<i32>} : memref<4x8x128xf32, #tpu.memory_space<vmem>>, vector<1x8x128xf32>,
    %c2 = arith.constant 2 : index
    %c0_40 = arith.constant 0 : index
    %c0_41 = arith.constant 0 : index
    %60 = vector.load %arg5[%c2, %c0_40, %c0_41] : memref<4x2x32xf32, #tpu.memory_space<vmem>>, vector<1x2x32xf32>
    %61 = vector.shape_cast %60 : vector<1x2x32xf32> to vector<2x32xf32>
    %62 = vector.extract_strided_slice %3 {offsets = [0, 64], sizes = [8, 32], strides = [1, 1]} : vector<8x128xf32> to vector<8x32xf32>
    %63 = vector.extract_strided_slice %61 {offsets = [0, 0], sizes = [1, 32], strides = [1, 1]} : vector<2x32xf32> to vector<1x32xf32>
    %64 = vector.broadcast %63 : vector<1x32xf32> to vector<8x32xf32>
    %65 = arith.addf %62, %64 : vector<8x32xf32>
    %cst_42 = arith.constant 0.000000e+00 : f32
    %66 = vector.broadcast %cst_42 : f32 to vector<8x32xf32>
    %67 = arith.maximumf %65, %66 : vector<8x32xf32>
    %c2_43 = arith.constant 2 : index
    %c0_44 = arith.constant 0 : index
    %c0_45 = arith.constant 0 : index
    %68 = vector.load %arg3[%c2_43, %c0_44, %c0_45] : memref<4x32x32xbf16, #tpu.memory_space<vmem>>, vector<1x32x32xbf16>
    %69 = vector.shape_cast %68 : vector<1x32x32xbf16> to vector<32x32xbf16>
    %70 = arith.extf %69 : vector<32x32xbf16> to vector<32x32xf32>
    %cst_46 = arith.constant dense<0.000000e+00> : vector<8x32xf32>
    %71 = tpu.matmul %67, %70, %cst_46 {dimension_numbers = #tpu.dot_dimension_numbers<[1], [0], [0], [1], [0, 0, 1, 1], [], []>} : vector<8x32xf32>, vector<32x32xf32>, vector<8x32xf32> -> vector<8x32xf32>
    %72 = vector.extract_strided_slice %61 {offsets = [1, 0], sizes = [1, 32], strides = [1, 1]} : vector<2x32xf32> to vector<1x32xf32>
    %73 = vector.broadcast %72 : vector<1x32xf32> to vector<8x32xf32>
    %74 = arith.addf %71, %73 : vector<8x32xf32>
    %cst_47 = arith.constant 0.000000e+00 : f32
    %75 = vector.broadcast %cst_47 : f32 to vector<8x32xf32>
    %76 = arith.maximumf %74, %75 : vector<8x32xf32>
    %c2_48 = arith.constant 2 : index
    %c0_49 = arith.constant 0 : index
    %c0_50 = arith.constant 0 : index
    %77 = vector.load %arg4[%c2_48, %c0_49, %c0_50] : memref<4x32x128xbf16, #tpu.memory_space<vmem>>, vector<1x32x128xbf16>
    %78 = vector.shape_cast %77 : vector<1x32x128xbf16> to vector<32x128xbf16>
    %79 = arith.extf %78 : vector<32x128xbf16> to vector<32x128xf32>
    %cst_51 = arith.constant dense<0.000000e+00> : vector<8x128xf32>
    %80 = tpu.matmul %76, %79, %cst_51 {dimension_numbers = #tpu.dot_dimension_numbers<[1], [0], [0], [1], [0, 0, 1, 1], [], []>} : vector<8x32xf32>, vector<32x128xf32>, vector<8x128xf32> -> vector<8x128xf32>
    %c2_52 = arith.constant 2 : index
    %c0_53 = arith.constant 0 : index
    %c0_54 = arith.constant 0 : index
    %81 = vector.load %arg6[%c2_52, %c0_53, %c0_54] : memref<4x1x128xf32, #tpu.memory_space<vmem>>, vector<1x1x128xf32>
    %82 = vector.shape_cast %81 : vector<1x1x128xf32> to vector<1x128xf32>
    %83 = vector.broadcast %82 : vector<1x128xf32> to vector<8x128xf32>
    %84 = arith.addf %80, %83 : vector<8x128xf32>
    %c2_55 = arith.constant 2 : index
    %c0_56 = arith.constant 0 : index
    %c0_57 = arith.constant 0 : index
    %85 = vector.load %arg7[%c2_55, %c0_56, %c0_57] : memref<4x8x128xf32, #tpu.memory_space<vmem>>, vector<1x8x128xf32>
    %86 = vector.shape_cast %85 : vector<1x8x128xf32> to vector<8x128xf32>
    %87 = vector.shape_cast %84 : vector<8x128xf32> to vector<1x8x128xf32>
    tpu.vector_store %arg7[%c2_55, %c0_56, %c0_57], %87 {strides = array<i32>} : memref<4x8x128xf32, #tpu.memory_space<vmem>>, vector<1x8x128xf32>,
    %c3 = arith.constant 3 : index
    %c0_58 = arith.constant 0 : index
    %c0_59 = arith.constant 0 : index
    %88 = vector.load %arg5[%c3, %c0_58, %c0_59] : memref<4x2x32xf32, #tpu.memory_space<vmem>>, vector<1x2x32xf32>
    %89 = vector.shape_cast %88 : vector<1x2x32xf32> to vector<2x32xf32>
    %90 = vector.extract_strided_slice %3 {offsets = [0, 96], sizes = [8, 32], strides = [1, 1]} : vector<8x128xf32> to vector<8x32xf32>
    %91 = vector.extract_strided_slice %89 {offsets = [0, 0], sizes = [1, 32], strides = [1, 1]} : vector<2x32xf32> to vector<1x32xf32>
    %92 = vector.broadcast %91 : vector<1x32xf32> to vector<8x32xf32>
    %93 = arith.addf %90, %92 : vector<8x32xf32>
    %cst_60 = arith.constant 0.000000e+00 : f32
    %94 = vector.broadcast %cst_60 : f32 to vector<8x32xf32>
    %95 = arith.maximumf %93, %94 : vector<8x32xf32>
    %c3_61 = arith.constant 3 : index
    %c0_62 = arith.constant 0 : index
    %c0_63 = arith.constant 0 : index
    %96 = vector.load %arg3[%c3_61, %c0_62, %c0_63] : memref<4x32x32xbf16, #tpu.memory_space<vmem>>, vector<1x32x32xbf16>
    %97 = vector.shape_cast %96 : vector<1x32x32xbf16> to vector<32x32xbf16>
    %98 = arith.extf %97 : vector<32x32xbf16> to vector<32x32xf32>
    %cst_64 = arith.constant dense<0.000000e+00> : vector<8x32xf32>
    %99 = tpu.matmul %95, %98, %cst_64 {dimension_numbers = #tpu.dot_dimension_numbers<[1], [0], [0], [1], [0, 0, 1, 1], [], []>} : vector<8x32xf32>, vector<32x32xf32>, vector<8x32xf32> -> vector<8x32xf32>
    %100 = vector.extract_strided_slice %89 {offsets = [1, 0], sizes = [1, 32], strides = [1, 1]} : vector<2x32xf32> to vector<1x32xf32>
    %101 = vector.broadcast %100 : vector<1x32xf32> to vector<8x32xf32>
    %102 = arith.addf %99, %101 : vector<8x32xf32>
    %cst_65 = arith.constant 0.000000e+00 : f32
    %103 = vector.broadcast %cst_65 : f32 to vector<8x32xf32>
    %104 = arith.maximumf %102, %103 : vector<8x32xf32>
    %c3_66 = arith.constant 3 : index
    %c0_67 = arith.constant 0 : index
    %c0_68 = arith.constant 0 : index
    %105 = vector.load %arg4[%c3_66, %c0_67, %c0_68] : memref<4x32x128xbf16, #tpu.memory_space<vmem>>, vector<1x32x128xbf16>
    %106 = vector.shape_cast %105 : vector<1x32x128xbf16> to vector<32x128xbf16>
    %107 = arith.extf %106 : vector<32x128xbf16> to vector<32x128xf32>
    %cst_69 = arith.constant dense<0.000000e+00> : vector<8x128xf32>
    %108 = tpu.matmul %104, %107, %cst_69 {dimension_numbers = #tpu.dot_dimension_numbers<[1], [0], [0], [1], [0, 0, 1, 1], [], []>} : vector<8x32xf32>, vector<32x128xf32>, vector<8x128xf32> -> vector<8x128xf32>
    %c3_70 = arith.constant 3 : index
    %c0_71 = arith.constant 0 : index
    %c0_72 = arith.constant 0 : index
    %109 = vector.load %arg6[%c3_70, %c0_71, %c0_72] : memref<4x1x128xf32, #tpu.memory_space<vmem>>, vector<1x1x128xf32>
    %110 = vector.shape_cast %109 : vector<1x1x128xf32> to vector<1x128xf32>
    %111 = vector.broadcast %110 : vector<1x128xf32> to vector<8x128xf32>
    %112 = arith.addf %108, %111 : vector<8x128xf32>
    %c3_73 = arith.constant 3 : index
    %c0_74 = arith.constant 0 : index
    %c0_75 = arith.constant 0 : index
    %113 = vector.load %arg7[%c3_73, %c0_74, %c0_75] : memref<4x8x128xf32, #tpu.memory_space<vmem>>, vector<1x8x128xf32>
    %114 = vector.shape_cast %113 : vector<1x8x128xf32> to vector<8x128xf32>
    %115 = vector.shape_cast %112 : vector<8x128xf32> to vector<1x8x128xf32>
    tpu.vector_store %arg7[%c3_73, %c0_74, %c0_75], %115 {strides = array<i32>} : memref<4x8x128xf32, #tpu.memory_space<vmem>>, vector<1x8x128xf32>,
    return
  }
  func.func @transform_0(%arg0: i32) -> (i32, i32) {
    %c0_i32 = arith.constant 0 : i32
    %c0_i32_0 = arith.constant 0 : i32
    %c0_i32_1 = arith.constant 0 : i32
    return %c0_i32, %c0_i32_0 : i32, i32
  }
  func.func @transform_1(%arg0: i32) -> (i32, i32) {
    %c0_i32 = arith.constant 0 : i32
    %c0_i32_0 = arith.constant 0 : i32
    return %c0_i32, %arg0 : i32, i32
  }
  func.func @transform_2(%arg0: i32) -> (i32, i32, i32) {
    %c0_i32 = arith.constant 0 : i32
    %c0_i32_0 = arith.constant 0 : i32
    %c0_i32_1 = arith.constant 0 : i32
    return %arg0, %c0_i32, %c0_i32_0 : i32, i32, i32
  }
  func.func @transform_3(%arg0: i32) -> (i32, i32, i32) {
    %c0_i32 = arith.constant 0 : i32
    %c0_i32_0 = arith.constant 0 : i32
    %c0_i32_1 = arith.constant 0 : i32
    return %arg0, %c0_i32, %c0_i32_0 : i32, i32, i32
  }
  func.func @transform_4(%arg0: i32) -> (i32, i32, i32) {
    %c0_i32 = arith.constant 0 : i32
    %c0_i32_0 = arith.constant 0 : i32
    %c0_i32_1 = arith.constant 0 : i32
    return %arg0, %c0_i32, %c0_i32_0 : i32, i32, i32
  }
  func.func @transform_5(%arg0: i32) -> (i32, i32, i32) {
    %c0_i32 = arith.constant 0 : i32
    %c0_i32_0 = arith.constant 0 : i32
    %c0_i32_1 = arith.constant 0 : i32
    return %arg0, %c0_i32, %c0_i32_0 : i32, i32, i32
  }
  func.func @transform_6(%arg0: i32) -> (i32, i32, i32) {
    %c0_i32 = arith.constant 0 : i32
    %c0_i32_0 = arith.constant 0 : i32
    %c0_i32_1 = arith.constant 0 : i32
    return %arg0, %c0_i32, %c0_i32_0 : i32, i32, i32
  }
}

</mosaic_0001>

<bundles_post_ra>
// kernel: squeeze.6
= control target key start
LH: loop header
LB: loop body
LE: loop exit
PB: predicated region body
PF: predicated region fallthrough
CT: control target
= control target key end

     0   :  { %vm8_vm0 = vcmask 130048   ;;  %s40_s8 = smov 96   ;;  %s60_s0 = inlined_call_operand.vmem [shape: f32[1,2,48], index: 0, kind: input, shape index: {}]   ;;  %s61_s1 = inlined_call_operand.vmem [shape: f32[2,3,16], index: 1, kind: output, shape index: {}]  }
   0x1   :  { %v5_v0 = vld [vmem:[%s60_s0] sm:$0x3]  ;;  %s39_s0 = smov 112  }
   0x2   :  { %6 = vst [vmem:[#allocation1] sm:$0x3] %v5_v0 }
   0x9   :  { %v10_v1 = vld [vmem:[#allocation1] sm:$0x3]  }
   0xa   :  { %v7_v2 = vld [vmem:[#allocation1] sm:$0x3]   ;;  %11 = vrot.lane.b32.xlu0 %v10_v1, %s39_s0 }
   0xb   :  { %9 = vst.msk [vmem:[#allocation0] ss:$8 sm:$0x3] %vm8_vm0, %v7_v2   ;;  %v16_v3 = vld [vmem:[#allocation1] sm:$0x3]  }
   0xe   :  { %17 = vrot.lane.b32.xlu0 %v16_v3, %s40_s8 }
  0x7c   :  { %v12_v4 = vpop.permute.xlu0 %11  }
  0x7d   :  { %15 = vst.msk [vmem:[#allocation0 + $0x1] ss:$8 sm:$0x3] %vm8_vm0, %v12_v4  }
  0x80   :  { %v18_v5 = vpop.permute.xlu0 %17  }
  0x81   :  { %21 = vst.msk [vmem:[#allocation0 + $0x2] ss:$8 sm:$0x3] %vm8_vm0, %v18_v5  }
  0x88   :  { %v26_v6 = vld [vmem:[#allocation0] sm:$0xf]  ;;  %v31_v7 = vld [vmem:[#allocation0 + $0x8] sm:$0xf] }
  0x89   :  { %29 = vst [vmem:[%s61_s1] sm:$0xf] %v26_v6  ;;  %36 = vst [vmem:[%s61_s1 + $0x4] sm:$0xf] %v31_v7 }

// kernel: squeeze.4
= control target key start
LH: loop header
LB: loop body
LE: loop exit
PB: predicated region body
PF: predicated region fallthrough
CT: control target
= control target key end

     0   :  { %s131_s8 = smov 122   ;;  %s132_s9 = smov 124   ;;  %vm8_vm0 = vcmask 15360   ;;  %s222_s0 = inlined_call_operand.vmem [shape: f32[1,2,32], index: 0, kind: input, shape index: {}]   ;;  %s223_s1 = inlined_call_operand.vmem [shape: f32[2,16,2], index: 1, kind: output, shape index: {}]  }
   0x1   :  { %v5_v0 = vld [vmem:[%s222_s0] sm:$0x3]  ;;  %s130_s0 = smov 126   ;;  %s133_s10 = smov 120  }
   0x2   :  { %6 = vst [vmem:[#allocation0] sm:$0x3] %v5_v0  ;;  %s134_s11 = smov 118   ;;  %s135_s12 = smov 116  }
   0x3   :  { %s136_s13 = smov 114   ;;  %s137_s14 = smov 112  }
   0x4   :  { %s138_s17 = smov 110   ;;  %s139_s18 = smov 108  }
   0x5   :  { %s140_s19 = smov 106   ;;  %s141_s20 = smov 104  }
   0x6   :  { %s142_s21 = smov 102   ;;  %s143_s22 = smov 100  }
   0x7   :  { %s144_s23 = smov 98  }
   0x9   :  { %v10_v1 = vld [vmem:[#allocation0] sm:$0x3]  }
   0xa   :  { %v22_v2 = vld [vmem:[#allocation0] sm:$0x3]   ;;  %11 = vrot.lane.b32.xlu0 %v10_v1, %s130_s0 }
   0xb   :  { %23 = vrot.lane.b32.xlu1 %v22_v2, %s131_s8  ;;  %v16_v3 = vld [vmem:[#allocation0] sm:$0x3]  }
   0xc   :  { %v28_v4 = vld [vmem:[#allocation0] sm:$0x3]  }
   0xd   :  { %v34_v5 = vld [vmem:[#allocation0] sm:$0x3]  }
   0xe   :  { %17 = vrot.lane.b32.xlu0 %v16_v3, %s132_s9  ;;  %v40_v6 = vld [vmem:[#allocation0] sm:$0x3]  }
   0xf   :  { %29 = vrot.lane.b32.xlu1 %v28_v4, %s133_s10  ;;  %v46_v7 = vld [vmem:[#allocation0] sm:$0x3]  }
  0x10   :  { %v52_v8 = vld [vmem:[#allocation0] sm:$0x3]  }
  0x11   :  { %v58_v9 = vld [vmem:[#allocation0] sm:$0x3]  }
  0x12   :  { %35 = vrot.lane.b32.xlu0 %v34_v5, %s134_s11  ;;  %v64_v10 = vld [vmem:[#allocation0] sm:$0x3]  }
  0x13   :  { %41 = vrot.lane.b32.xlu1 %v40_v6, %s135_s12  ;;  %v7_v11 = vld [vmem:[#allocation0] sm:$0x3]  }
  0x14   :  { %9 = vst.msk [vmem:[%s223_s1] ss:$16 sm:$0x3] %vm8_vm0, %v7_v11   ;;  %v70_v12 = vld [vmem:[#allocation0] sm:$0x3]  }
  0x15   :  { %v76_v13 = vld [vmem:[#allocation0] sm:$0x3]  }
  0x16   :  { %47 = vrot.lane.b32.xlu0 %v46_v7, %s136_s13  ;;  %v82_v14 = vld [vmem:[#allocation0] sm:$0x3]  }
  0x17   :  { %53 = vrot.lane.b32.xlu1 %v52_v8, %s137_s14  ;;  %v88_v15 = vld [vmem:[#allocation0] sm:$0x3]  }
  0x18   :  { %v94_v16 = vld [vmem:[#allocation0] sm:$0x3]  }
  0x1a   :  { %59 = vrot.lane.b32.xlu0 %v58_v9, %s138_s17 }
  0x1b   :  { %65 = vrot.lane.b32.xlu1 %v64_v10, %s139_s18 }
  0x1e   :  { %71 = vrot.lane.b32.xlu0 %v70_v12, %s140_s19 }
  0x1f   :  { %77 = vrot.lane.b32.xlu1 %v76_v13, %s141_s20 }
  0x22   :  { %83 = vrot.lane.b32.xlu0 %v82_v14, %s142_s21 }
  0x23   :  { %89 = vrot.lane.b32.xlu1 %v88_v15, %s143_s22 }
  0x26   :  { %95 = vrot.lane.b32.xlu0 %v94_v16, %s144_s23 }
  0x7c   :  { %v12_v17 = vpop.permute.xlu0 %11  }
  0x7d   :  { %v24_v18 = vpop.permute.xlu1 %23   ;;  %100 = vst.msk [vmem:[%s223_s1 + $0x1] ss:$16 sm:$0x3] %vm8_vm0, %v12_v17  }
  0x7e   :  { %102 = vst.msk [vmem:[%s223_s1 + $0x3] ss:$16 sm:$0x3] %vm8_vm0, %v24_v18  }
  0x80   :  { %v18_v19 = vpop.permute.xlu0 %17  }
  0x81   :  { %v30_v20 = vpop.permute.xlu1 %29   ;;  %101 = vst.msk [vmem:[%s223_s1 + $0x2] ss:$16 sm:$0x3] %vm8_vm0, %v18_v19  }
  0x82   :  { %103 = vst.msk [vmem:[%s223_s1 + $0x4] ss:$16 sm:$0x3] %vm8_vm0, %v30_v20  }
  0x84   :  { %v36_v21 = vpop.permute.xlu0 %35  }
  0x85   :  { %v42_v22 = vpop.permute.xlu1 %41   ;;  %104 = vst.msk [vmem:[%s223_s1 + $0x5] ss:$16 sm:$0x3] %vm8_vm0, %v36_v21  }
  0x86   :  { %105 = vst.msk [vmem:[%s223_s1 + $0x6] ss:$16 sm:$0x3] %vm8_vm0, %v42_v22  }
  0x88   :  { %v48_v23 = vpop.permute.xlu0 %47  }
  0x89   :  { %v54_v24 = vpop.permute.xlu1 %53   ;;  %106 = vst.msk [vmem:[%s223_s1 + $0x7] ss:$16 sm:$0x3] %vm8_vm0, %v48_v23  }
  0x8a   :  { %107 = vst.msk [vmem:[%s223_s1 + $0x8] ss:$16 sm:$0x3] %vm8_vm0, %v54_v24  }
  0x8c   :  { %v60_v25 = vpop.permute.xlu0 %59  }
  0x8d   :  { %v66_v26 = vpop.permute.xlu1 %65   ;;  %108 = vst.msk [vmem:[%s223_s1 + $0x9] ss:$16 sm:$0x3] %vm8_vm0, %v60_v25  }
  0x8e   :  { %109 = vst.msk [vmem:[%s223_s1 + $0xa] ss:$16 sm:$0x3] %vm8_vm0, %v66_v26  }
  0x90   :  { %v72_v27 = vpop.permute.xlu0 %71  }
  0x91   :  { %v78_v28 = vpop.permute.xlu1 %77   ;;  %110 = vst.msk [vmem:[%s223_s1 + $0xb] ss:$16 sm:$0x3] %vm8_vm0, %v72_v27  }
  0x92   :  { %111 = vst.msk [vmem:[%s223_s1 + $0xc] ss:$16 sm:$0x3] %vm8_vm0, %v78_v28  }
  0x94   :  { %v84_v29 = vpop.permute.xlu0 %83  }
  0x95   :  { %v90_v30 = vpop.permute.xlu1 %89   ;;  %112 = vst.msk [vmem:[%s223_s1 + $0xd] ss:$16 sm:$0x3] %vm8_vm0, %v84_v29  }
  0x96   :  { %113 = vst.msk [vmem:[%s223_s1 + $0xe] ss:$16 sm:$0x3] %vm8_vm0, %v90_v30  }
  0x98   :  { %v96_v31 = vpop.permute.xlu0 %95  }
  0x99   :  { %114 = vst.msk [vmem:[%s223_s1 + $0xf] ss:$16 sm:$0x3] %vm8_vm0, %v96_v31  }

// kernel: _forward.1
= control target key start
LH: loop header
LB: loop body
LE: loop exit
PB: predicated region body
PF: predicated region fallthrough
CT: control target
= control target key end

     0   :  { %11 = vsyncpa [#allocation3], 0  ;;  %s1421_s0 = inlined_call_operand.vmem [shape: f32[8,32], index: 0, kind: input, shape index: {}]   ;;  %s1422_s1 = inlined_call_operand.hbm [shape: bf16[32,128], index: 1, kind: input, shape index: {}]   ;;  %s1423_s2 = inlined_call_operand.hbm [shape: bf16[4,32,32], index: 2, kind: input, shape index: {}]   ;;  %s1424_s3 = inlined_call_operand.hbm [shape: bf16[4,32,128], index: 3, kind: input, shape index: {}]   ;;  %s1425_s4 = inlined_call_operand.vmem [shape: f32[4,2,32], index: 4, kind: input, shape index: {}]   ;;  %s1426_s5 = inlined_call_operand.vmem [shape: f32[4,1,128], index: 5, kind: input, shape index: {}]   ;;  %s1427_s6 = inlined_call_operand.vmem [shape: f32[4,8,128], index: 6, kind: output, shape index: {}]  }
   0x1   :  { %12 = vsyncpa [#allocation5], 0  ;;  %s1234_s21 = smov [#allocation4]   ;;  %s1235_s23 = smov [#allocation2]  }
   0x2   :  { %s32_s22 = sshll.u32 %s1234_s21, 4  ;;  %s20_s24 = sshll.u32 %s1235_s23, 4  ;;  %s33_s22 = int_to_ptr.vmem [resolvable:$true] %s32_s22  ;;  %s21_s24 = int_to_ptr.vmem [resolvable:$true] %s20_s24 }
   0x3   :  { %s1178_s25 = scalar_lea.vmem %s33_s22, 1024  ;;  %p1183_p1 = scmp.lt.s32.totalorder %s33_s22, %s33_s22 }
   0x4   :  { %p1179_p0 = scmp.ne.s32.totalorder %s33_s22, %s1178_s25  ;;  %p1184_p2 = scmp.lt.s32.totalorder %s1178_s25, %s1178_s25 }
   0x6   :  { %p1185_p3 = por %p1184_p2, %p1183_p1 }
   0x8   :  { %p1186_p4 = pnand %p1185_p3, %p1179_p0 }
   0xa   :  { %1189 = shalt.err (!%p1186_p4)
}
   0xb   :  { %s1236_s26 = smov 64   ;;  %s1237_s27 = smov 4  }
   0xc   :  { %38 = dma.hbm_to_vmem [thread:$0]  %s1423_s2, 1024, %s33_s22, [#allocation5], %s1236_s26, %s1236_s26, %s1237_s27  }
   0xd   :  { %s1198_s30 = scalar_lea.vmem %s21_s24, 256  ;;  %p1203_p6 = scmp.lt.s32.totalorder %s21_s24, %s21_s24 }
   0xe   :  { %p1199_p5 = scmp.ne.s32.totalorder %s21_s24, %s1198_s30  ;;  %p1204_p7 = scmp.lt.s32.totalorder %s1198_s30, %s1198_s30 }
  0x10   :  { %p1205_p8 = por %p1204_p7, %p1203_p6 }
  0x12   :  { %p1206_p9 = pnand %p1205_p8, %p1199_p5 }
  0x14   :  { %1209 = shalt.err (!%p1206_p9)
}
  0x15   :  { %26 = dma.hbm_to_vmem [thread:$0]  %s1422_s1, 256, %s21_s24, [#allocation3], %s1236_s26, %s1236_s26, %s1237_s27  }
  0x16   :  { %s1238_s9 = smov [#allocation6]  }
  0x17   :  { %s44_s10 = sshll.u32 %s1238_s9, 4  ;;  %s45_s10 = int_to_ptr.vmem [resolvable:$true] %s44_s10 }
  0x18   :  { %s1218_s11 = scalar_lea.vmem %s45_s10, 1024  ;;  %p1223_p11 = scmp.lt.s32.totalorder %s45_s10, %s45_s10 }
  0x19   :  { %p1219_p10 = scmp.ne.s32.totalorder %s45_s10, %s1218_s11  ;;  %p1224_p12 = scmp.lt.s32.totalorder %s1218_s11, %s1218_s11 }
  0x1b   :  { %p1225_p13 = por %p1224_p12, %p1223_p11 }
  0x1d   :  { %p1226_p0 = pnand %p1225_p13, %p1219_p10 }
  0x1f   :  { %1229 = shalt.err (!%p1226_p0)
}
  0x20   :  { %50 = dma.hbm_to_vmem [thread:$0]  %s1424_s3, 1024, %s45_s10, [#allocation5], %s1236_s26, %s1236_s26, %s1237_s27  }
  0x21   :  { %1230 = dma.done.wait [#allocation3], 256  }
  0x22   :  { %1231 = vsyncadd [#allocation3], 4294967040 }
  0x23   :  { %1232 = dma.done.wait [#allocation5], 2048  }
  0x24   :  { %1233 = vsyncadd [#allocation5], 4294965248  ;;  %v148_v0 = vlaneseq  ;;  %v1239_v1 = vmov 0.0   ;;  %vm1240_vm0 = vmmov 0   ;;  %v1008_v4 = vld [vmem:[#allocation2 + $0x8] sm:$0xff]   ;;  %v937_v5 = vld [vmem:[#allocation2] sm:$0xff]  }
  0x25   :  { %1062 = vmatprep.subr.mxu0 %v1239_v1  ;;  %1070 = vmatprep.mubr.msk.f32.mxu0 %vm1240_vm0, %v1239_v1  ;;  %v942_v6 = vunpack.c.l.bf16 %v1008_v4  ;;  %v943_v7 = vunpack.c.h.bf16 %v1008_v4  ;;  %v1305_v8 = vld [vmem:[%s1425_s4 + $0x2] sm:$0x3]  ;;  %v1310_v9 = vld [vmem:[%s1425_s4 + $0x6] sm:$0x3]  ;;  %v1315_v10 = vld [vmem:[%s1425_s4 + $0x4] sm:$0x3]  ;;  %v939_v14 = vunpack.c.h.bf16 %v937_v5  ;;  %v938_v17 = vunpack.c.l.bf16 %v937_v5 }
  0x26   :  { %v1296_v2 = vshrl.u32 %v148_v0, 7  ;;  %1073 = vmatprep.subr.mxu1 %v1239_v1  ;;  %1081 = vmatprep.mubr.msk.f32.mxu1 %vm1240_vm0, %v1239_v1  ;;  %v1009_v13 = vld [vmem:[#allocation4 + $0x8] sm:$0xff]   ;;  %s1241_s17 = smov 32   ;;  %s1242_s18 = smov 96   ;;  %v64_v19 = vld [vmem:[%s1421_s0] sm:$0xff]  ;;  %vm73_vm1 = vcmask 261120  }
  0x27   :  { %1063 = vmatpush3.msra.mxu0 %v943_v7  ;;  %v951_v15 = vunpack.c.h.bf16 %v1009_v13  ;;  %v950_v18 = vunpack.c.l.bf16 %v1009_v13  ;;  %v945_v20 = vld [vmem:[#allocation4] sm:$0xff]   ;;  %v1340_v24 = vld [vmem:[%s1425_s4] sm:$0x3]  ;;  %v1011_v27 = vld [vmem:[#allocation4 + $0x18] sm:$0xff]  }
  0x28   :  { %v150_v3 = vsub.s32 0, %v1296_v2  ;;  %1064 = vmatprep.subr.mxu0 %v1239_v1  ;;  %v947_v21 = vunpack.c.h.bf16 %v945_v20  ;;  %v946_v22 = vunpack.c.l.bf16 %v945_v20  ;;  %v967_v34 = vunpack.c.h.bf16 %v1011_v27  ;;  %v961_v39 = vld [vmem:[#allocation4 + $0x10] sm:$0xff]   ;;  %v1010_v43 = vld [vmem:[#allocation6 + $0x8] sm:$0xff]   ;;  %v953_v47 = vld [vmem:[#allocation6] sm:$0xff]  }
  0x29   :  { %1065 = vmatpush3.msra.mxu0 %v942_v6  ;;  %1074 = vmatpush3.msra.mxu1 %v951_v15  ;;  %v966_v40 = vunpack.c.l.bf16 %v1011_v27  ;;  %v963_v42 = vunpack.c.h.bf16 %v961_v39  ;;  %v962_v44 = vunpack.c.l.bf16 %v961_v39  ;;  %v959_v45 = vunpack.c.h.bf16 %v1010_v43  ;;  %v1013_v50 = vld [vmem:[#allocation4 + $0x28] sm:$0xff]   ;;  %v977_v52 = vld [vmem:[#allocation4 + $0x20] sm:$0xff]   ;;  %v1015_v56 = vld [vmem:[#allocation4 + $0x38] sm:$0xff]  }
  0x2a   :  { %v334_v11 = vrot.slane %v1305_v8, %v150_v3  ;;  %v720_v12 = vrot.slane %v1310_v9, %v150_v3  ;;  %v527_v16 = vrot.slane %v1315_v10, %v150_v3  ;;  %1066 = vmatprep.subr.mxu0 %v1239_v1  ;;  %1075 = vmatprep.subr.mxu1 %v1239_v1  ;;  %v958_v46 = vunpack.c.l.bf16 %v1010_v43  ;;  %v993_v59 = vld [vmem:[#allocation4 + $0x30] sm:$0xff]   ;;  %v1012_v5 = vld [vmem:[#allocation6 + $0x18] sm:$0xff]  }
  0x2b   :  { %1067 = vmatpush3.msra.mxu0 %v939_v14  ;;  %1076 = vmatpush3.msra.mxu1 %v950_v18  ;;  %v151_v25 = vrot.slane %v1340_v24, %v150_v3  ;;  %v955_v48 = vunpack.c.h.bf16 %v953_v47  ;;  %v954_v49 = vunpack.c.l.bf16 %v953_v47  ;;  %v983_v51 = vunpack.c.h.bf16 %v1013_v50  ;;  %v969_v14 = vld [vmem:[#allocation6 + $0x10] sm:$0xff]   ;;  %v1014_v18 = vld [vmem:[#allocation6 + $0x28] sm:$0xff]  }
  0x2c   :  { %336 = vrot.lane.b32.xlu0 %v334_v11, %s1241_s17  ;;  %722 = vrot.lane.b32.xlu1 %v720_v12, %s1242_s18  ;;  %v982_v54 = vunpack.c.l.bf16 %v1013_v50  ;;  %v979_v55 = vunpack.c.h.bf16 %v977_v52  ;;  %v978_v57 = vunpack.c.l.bf16 %v977_v52  ;;  %v999_v58 = vunpack.c.h.bf16 %v1015_v56  ;;  %v933_v52 = vld [vmem:[%s1426_s5 + $0x3] ss:$0 sm:$0xff] }
  0x2d   :  { %1068 = vmatprep.subr.mxu0 %v1239_v1  ;;  %1077 = vmatprep.subr.mxu1 %v1239_v1  ;;  %v998_v61 = vunpack.c.l.bf16 %v1015_v56  ;;  %v995_v62 = vunpack.c.h.bf16 %v993_v59  ;;  %v994_v63 = vunpack.c.l.bf16 %v993_v59  ;;  %v164_v3 = vsub.s32 1, %v1296_v2 }
  0x2e   :  { %1069 = vmatpush3.msra.mxu0 %v938_v17  ;;  %1078 = vmatpush3.msra.mxu1 %v947_v21  ;;  %v975_v12 = vunpack.c.h.bf16 %v1012_v5  ;;  %v974_v15 = vunpack.c.l.bf16 %v1012_v5  ;;  %v970_v2 = vunpack.c.l.bf16 %v969_v14 }
  0x2f   :  { %1071 = vmatmul.mubr.msk.f32.vlgmr.msra.gmra.mxu0 %vm73_vm1, %v64_v19  ;;  %1084 = vmatprep.subr.mxu0 %v1239_v1  ;;  %v165_v4 = vrot.slane %v1340_v24, %v164_v3  ;;  %v353_v17 = vrot.slane %v1305_v8, %v164_v3  ;;  %v985_v24 = vld [vmem:[#allocation6 + $0x20] sm:$0xff]   ;;  %v1016_v8 = vld [vmem:[#allocation6 + $0x38] sm:$0xff]  }
  0x30   :  { %529 = vrot.lane.b32.xlu0 %v527_v16, %s1236_s26  ;;  %1092 = vmatprep.mubr.msk.f32.mxu0 %vm1240_vm0, %v1239_v1  ;;  %v971_v16 = vunpack.c.h.bf16 %v969_v14  ;;  %v987_v27 = vunpack.c.h.bf16 %v985_v24 }
  0x31   :  { %1079 = vmatprep.subr.mxu1 %v1239_v1  ;;  %1085 = vmatpush3.msra.mxu0 %v959_v45  ;;  %v921_v45 = vld [vmem:[%s1426_s5 + $0x1] ss:$0 sm:$0xff] }
  0x32   :  { %1080 = vmatpush3.msra.mxu1 %v946_v22  ;;  %1086 = vmatprep.subr.mxu0 %v1239_v1  ;;  %v991_v22 = vunpack.c.h.bf16 %v1014_v18 }
  0x33   :  { %1095 = vmatprep.subr.mxu1 %v1239_v1  ;;  %1087 = vmatpush3.msra.mxu0 %v958_v46 }
  0x34   :  { %1088 = vmatprep.subr.mxu0 %v1239_v1 }
  0x35   :  { %1089 = vmatpush3.msra.mxu0 %v955_v48  ;;  %v927_v48 = vld [vmem:[%s1426_s5 + $0x2] ss:$0 sm:$0xff] }
  0x36   :  { %1090 = vmatprep.subr.mxu0 %v1239_v1 }
  0x37   :  { %1091 = vmatpush3.msra.mxu0 %v954_v49 }
  0x38   :  { %1106 = vmatprep.subr.mxu0 %v1239_v1 }
  0x9e   :  { %v337_v23 = vpop.permute.xlu0 %336  ;;  %v723_v28 = vpop.permute.xlu1 %722 }
  0xa2   :  { %v530_v26 = vpop.permute.xlu0 %529 }
  0xef   :  { %v143_v29 = vpop.f32.mrf.mxu0 }
  0xf0   :  { %v152_v30 = vadd.f32 %v151_v25, %v143_v29  ;;  %v532_v31 = vadd.f32 %v530_v26, %v143_v29  ;;  %v339_v32 = vadd.f32 %v337_v23, %v143_v29  ;;  %v725_v38 = vadd.f32 %v723_v28, %v143_v29 }
  0xf1   :  { %v1072_v33 = vpop.f32.mrf.mxu0  ;;  %v990_v25 = vunpack.c.l.bf16 %v1014_v18  ;;  %v546_v26 = vrot.slane %v1315_v10, %v164_v3  ;;  %v986_v29 = vunpack.c.l.bf16 %v985_v24  ;;  %v1001_v10 = vld [vmem:[#allocation6 + $0x30] sm:$0xff]  }
  0xf2   :  { %v153_v35 = vmax.f32 %v152_v30, 0.0  ;;  %v533_v36 = vmax.f32 %v532_v31, 0.0  ;;  %v340_v37 = vmax.f32 %v339_v32, 0.0  ;;  %v726_v41 = vmax.f32 %v725_v38, 0.0 }
  0xf3   :  { %v1007_v32 = vunpack.c.h.bf16 %v1016_v8  ;;  %v1002_v38 = vunpack.c.l.bf16 %v1001_v10 }
  0xf4   :  { %548 = vrot.lane.b32.xlu0 %v533_v36, %s1236_s26  ;;  %355 = vrot.lane.b32.xlu1 %v340_v37, %s1242_s18  ;;  %v1003_v36 = vunpack.c.h.bf16 %v1001_v10 }
  0xf5   :  { %1082 = vmatmul.mubr.msk.f32.vlgmr.msra.gmra.mxu1 %vm73_vm1, %v153_v35  ;;  %v739_v35 = vrot.slane %v1310_v9, %v164_v3  ;;  %v916_v9 = vld [vmem:[%s1426_s5] ss:$0 sm:$0xff] }
  0xf6   :  { %1096 = vmatpush3.msra.mxu1 %v967_v34  ;;  %1103 = vmatprep.mubr.msk.f32.mxu1 %vm1240_vm0, %v1239_v1  ;;  %v1006_v34 = vunpack.c.l.bf16 %v1016_v8 }
  0xf7   :  { %1097 = vmatprep.subr.mxu1 %v1239_v1 }
  0xf8   :  { %741 = vrot.lane.b32.xlu1 %v726_v41, %s1241_s17  ;;  %1098 = vmatpush3.msra.mxu1 %v966_v40 }
  0xf9   :  { %1099 = vmatprep.subr.mxu1 %v1239_v1 }
  0xfa   :  { %1100 = vmatpush3.msra.mxu1 %v963_v42 }
  0xfb   :  { %1101 = vmatprep.subr.mxu1 %v1239_v1 }
  0xfc   :  { %1102 = vmatpush3.msra.mxu1 %v962_v44 }
  0xfd   :  { %1117 = vmatprep.subr.mxu1 %v1239_v1 }
 0x166   :  { %v356_v53 = vpop.permute.xlu1 %355  ;;  %v549_v60 = vpop.permute.xlu0 %548 }
 0x167   :  { %1104 = vmatmul.mubr.msk.f32.vlgmr.msra.gmra.mxu1 %vm73_vm1, %v356_v53 }
 0x168   :  { %1118 = vmatpush3.msra.mxu1 %v983_v51  ;;  %1125 = vmatprep.mubr.msk.f32.mxu1 %vm1240_vm0, %v1239_v1 }
 0x169   :  { %1119 = vmatprep.subr.mxu1 %v1239_v1 }
 0x16a   :  { %1120 = vmatpush3.msra.mxu1 %v982_v54  ;;  %v742_v0 = vpop.permute.xlu1 %741 }
 0x16b   :  { %1121 = vmatprep.subr.mxu1 %v1239_v1 }
 0x16c   :  { %1122 = vmatpush3.msra.mxu1 %v979_v55 }
 0x16d   :  { %1123 = vmatprep.subr.mxu1 %v1239_v1 }
 0x16e   :  { %1124 = vmatpush3.msra.mxu1 %v978_v57 }
 0x16f   :  { %1126 = vmatmul.mubr.msk.f32.vlgmr.msra.gmra.mxu1 %vm73_vm1, %v549_v60  ;;  %1139 = vmatprep.subr.mxu1 %v1239_v1 }
 0x170   :  { %1140 = vmatpush3.msra.mxu1 %v999_v58  ;;  %1147 = vmatprep.mubr.msk.f32.mxu1 %vm1240_vm0, %v1239_v1 }
 0x171   :  { %1141 = vmatprep.subr.mxu1 %v1239_v1 }
 0x172   :  { %1142 = vmatpush3.msra.mxu1 %v998_v61 }
 0x173   :  { %1143 = vmatprep.subr.mxu1 %v1239_v1 }
 0x174   :  { %1144 = vmatpush3.msra.mxu1 %v995_v62 }
 0x175   :  { %1145 = vmatprep.subr.mxu1 %v1239_v1 }
 0x176   :  { %1146 = vmatpush3.msra.mxu1 %v994_v63 }
 0x177   :  { %1148 = vmatmul.mubr.msk.f32.vlgmr.msra.gmra.mxu1 %vm73_vm1, %v742_v0 }
 0x1b5   :  { %v235_v6 = vpop.f32.mrf.mxu1 }
 0x1b6   :  { %v236_v7 = vadd.f32 %v235_v6, %v165_v4 }
 0x1b7   :  { %v1083_v11 = vpop.f32.mrf.mxu1 }
 0x1b8   :  { %v239_v13 = vmax.f32 %v236_v7, 0.0 }
 0x1ba   :  { %1093 = vmatmul.mubr.msk.f32.vlgmr.msra.gmra.mxu0 %vm73_vm1, %v239_v13 }
 0x1bb   :  { %1107 = vmatpush3.msra.mxu0 %v975_v12  ;;  %1114 = vmatprep.mubr.msk.f32.mxu0 %vm1240_vm0, %v1239_v1 }
 0x1bc   :  { %1108 = vmatprep.subr.mxu0 %v1239_v1 }
 0x1bd   :  { %1109 = vmatpush3.msra.mxu0 %v974_v15 }
 0x1be   :  { %1110 = vmatprep.subr.mxu0 %v1239_v1 }
 0x1bf   :  { %1111 = vmatpush3.msra.mxu0 %v971_v16 }
 0x1c0   :  { %1112 = vmatprep.subr.mxu0 %v1239_v1 }
 0x1c1   :  { %1113 = vmatpush3.msra.mxu0 %v970_v2 }
 0x1c2   :  { %1128 = vmatprep.subr.mxu0 %v1239_v1 }
 0x227   :  { %v425_v19 = vpop.f32.mrf.mxu1 }
 0x228   :  { %v426_v20 = vadd.f32 %v425_v19, %v353_v17 }
 0x229   :  { %v1105_v21 = vpop.f32.mrf.mxu1 }
 0x22a   :  { %v429_v23 = vmax.f32 %v426_v20, 0.0 }
 0x22c   :  { %1115 = vmatmul.mubr.msk.f32.vlgmr.msra.gmra.mxu0 %vm73_vm1, %v429_v23 }
 0x22d   :  { %1129 = vmatpush3.msra.mxu0 %v991_v22  ;;  %1136 = vmatprep.mubr.msk.f32.mxu0 %vm1240_vm0, %v1239_v1 }
 0x22e   :  { %1130 = vmatprep.subr.mxu0 %v1239_v1 }
 0x22f   :  { %v618_v28 = vpop.f32.mrf.mxu1  ;;  %1131 = vmatpush3.msra.mxu0 %v990_v25 }
 0x230   :  { %v619_v30 = vadd.f32 %v618_v28, %v546_v26  ;;  %1132 = vmatprep.subr.mxu0 %v1239_v1 }
 0x231   :  { %v1127_v31 = vpop.f32.mrf.mxu1  ;;  %1133 = vmatpush3.msra.mxu0 %v987_v27 }
 0x232   :  { %v622_v33 = vmax.f32 %v619_v30, 0.0  ;;  %1134 = vmatprep.subr.mxu0 %v1239_v1 }
 0x233   :  { %1135 = vmatpush3.msra.mxu0 %v986_v29 }
 0x234   :  { %1137 = vmatmul.mubr.msk.f32.vlgmr.msra.gmra.mxu0 %vm73_vm1, %v622_v33  ;;  %1150 = vmatprep.subr.mxu0 %v1239_v1 }
 0x235   :  { %1151 = vmatpush3.msra.mxu0 %v1007_v32  ;;  %1158 = vmatprep.mubr.msk.f32.mxu0 %vm1240_vm0, %v1239_v1 }
 0x236   :  { %1152 = vmatprep.subr.mxu0 %v1239_v1 }
 0x237   :  { %v811_v37 = vpop.f32.mrf.mxu1  ;;  %1153 = vmatpush3.msra.mxu0 %v1006_v34 }
 0x238   :  { %v812_v39 = vadd.f32 %v811_v37, %v739_v35  ;;  %1154 = vmatprep.subr.mxu0 %v1239_v1 }
 0x239   :  { %v1149_v40 = vpop.f32.mrf.mxu1  ;;  %1155 = vmatpush3.msra.mxu0 %v1003_v36 }
 0x23a   :  { %v815_v41 = vmax.f32 %v812_v39, 0.0  ;;  %1156 = vmatprep.subr.mxu0 %v1239_v1 }
 0x23b   :  { %1157 = vmatpush3.msra.mxu0 %v1002_v38 }
 0x23c   :  { %1159 = vmatmul.mubr.msk.f32.vlgmr.msra.gmra.mxu0 %vm73_vm1, %v815_v41 }
 0x27a   :  { %v324_v42 = vpop.f32.mrf.mxu0 }
 0x27b   :  { %v325_v43 = vadd.f32 %v916_v9, %v324_v42 }
 0x27c   :  { %v1094_v44 = vpop.f32.mrf.mxu0 }
 0x27d   :  { %328 = vst [vmem:[%s1427_s6] sm:$0xff] %v325_v43 }
 0x2ec   :  { %v516_v46 = vpop.f32.mrf.mxu0 }
 0x2ed   :  { %v517_v1 = vadd.f32 %v921_v45, %v516_v46 }
 0x2ee   :  { %v1116_v47 = vpop.f32.mrf.mxu0 }
 0x2ef   :  { %923 = vst [vmem:[%s1427_s6 + $0x8] sm:$0xff] %v517_v1 }
 0x2f4   :  { %v709_v49 = vpop.f32.mrf.mxu0 }
 0x2f5   :  { %v710_v50 = vadd.f32 %v927_v48, %v709_v49 }
 0x2f6   :  { %v1138_v51 = vpop.f32.mrf.mxu0 }
 0x2f7   :  { %929 = vst [vmem:[%s1427_s6 + $0x10] sm:$0xff] %v710_v50 }
 0x2fc   :  { %v902_v53 = vpop.f32.mrf.mxu0 }
 0x2fd   :  { %v903_v54 = vadd.f32 %v933_v52, %v902_v53 }
 0x2fe   :  { %v1160_v55 = vpop.f32.mrf.mxu0 }
 0x2ff   :  { %935 = vst [vmem:[%s1427_s6 + $0x18] sm:$0xff] %v903_v54 }
 0x300   :  { %912 = vsyncpa [#allocation3], 1 }
 0x301   :  { %913 = vsyncpa [#allocation5], 1 }

</bundles_post_ra>
